<compile_context>
chip_gen: v5e
topology: v5e:2x2
jax: 0.10.0
libtpu: 0.0.40
codegen_flags: <defaults>
</compile_context>

<pallas_src>
from functools import partial

import jax
import jax.numpy as jnp
from jax.experimental import pallas as pl
from jax.experimental.pallas import tpu as pltpu

LANE = 128


def _round_up(n, m):
    return (n + m - 1) // m * m


def _pick_tile(B):
    """Batch tile size: multiple of 16 (bf16 sublane packing), multiple of 256
    for large batches (full MXU M-height), capped at 1024 rows, and >= 2 grid
    steps whenever B is large enough so v7x's second TensorCore gets work."""
    if B <= 32:
        return _round_up(max(B, 1), 16)            # single tile, minimal padding
    if B <= 512:
        return _round_up(pl.cdiv(B, 2), 16)        # >= 2 tiles, low padding waste
    return min(1024, _round_up(pl.cdiv(B, 2), 256))


def mlp_kernel(x_ref, w1_ref, b1_ref, w2_ref, b2_ref, w3_ref, b3_ref, o_ref):
    # Cast x to bf16 in-kernel (free VPU work hidden under the MXU).
    x = x_ref[...].astype(jnp.bfloat16)
    # Layer 1: bf16 MXU matmul, f32 accumulate, f32 epilogue (bias + ReLU).
    h = jnp.dot(x, w1_ref[...], preferred_element_type=jnp.float32)
    h = jnp.maximum(h + b1_ref[...], 0.0)
    # Layer 2
    h = jnp.dot(h.astype(jnp.bfloat16), w2_ref[...],
                preferred_element_type=jnp.float32)
    h = jnp.maximum(h + b2_ref[...], 0.0)
    # Layer 3 (no activation); store as bf16 (lane-dense, half the HBM bytes).
    out = jnp.dot(h.astype(jnp.bfloat16), w3_ref[...],
                  preferred_element_type=jnp.float32)
    o_ref[...] = (out + b3_ref[...]).astype(o_ref.dtype)


def pack_params(w1_t, b1, w2_t, b2, w3_t, b3):
    """Pad lane dims to multiples of 128 and cast weights to bf16.  Call ONCE;
    the packed tuple is reused by every classifier_forward invocation."""
    in_features, h1 = w1_t.shape
    h2 = w2_t.shape[1]
    out_features = w3_t.shape[1]
    h1_p, h2_p, out_p = (_round_up(d, LANE) for d in (h1, h2, out_features))

    def pad2(a, rows, cols, dtype):
        a = jnp.asarray(a)
        a = a if a.ndim == 2 else a.reshape(1, -1)
        return jnp.pad(a, ((0, rows - a.shape[0]),
                           (0, cols - a.shape[1]))).astype(dtype)

    packed = (
        pad2(w1_t, in_features, h1_p, jnp.bfloat16),  # K dim stays unpadded
        pad2(b1, 1, h1_p, jnp.float32),
        pad2(w2_t, h1_p, h2_p, jnp.bfloat16),
        pad2(b2, 1, h2_p, jnp.float32),
        pad2(w3_t, h2_p, out_p, jnp.bfloat16),
        pad2(b3, 1, out_p, jnp.float32),
    )
    return packed, out_features


@partial(jax.jit, static_argnames=("out_features",))
def classifier_forward(x, w1_p, b1_p, w2_p, b2_p, w3_p, b3_p, *, out_features):
    """x: (B, in_features) float32.  Packed params from pack_params().
    Returns (B, out_features) float32 logits."""
    B, in_features = x.shape
    h1_p = w1_p.shape[1]
    h2_p = w2_p.shape[1]
    out_p = w3_p.shape[1]

    TB = _pick_tile(B)
    B_p = _round_up(B, TB)
    if B_p != B:
        x = jnp.pad(x, ((0, B_p - B), (0, 0)))  # only pad batch when needed
    grid = (B_p // TB,)

    # Weights / biases: same block every grid step -> DMA'd once, VMEM-resident.
    def resident(shape):
        return pl.BlockSpec(shape, lambda i: (0, 0))

    out_padded = pl.pallas_call(
        mlp_kernel,
        out_shape=jax.ShapeDtypeStruct((B_p, out_p), jnp.bfloat16),
        grid=grid,
        in_specs=[
            # x streams per batch tile, f32, full (unpadded) feature width.
            pl.BlockSpec((TB, in_features), lambda i: (i, 0)),
            resident((in_features, h1_p)),
            resident((1, h1_p)),
            resident((h1_p, h2_p)),
            resident((1, h2_p)),
            resident((h2_p, out_p)),
            resident((1, out_p)),
        ],
        out_specs=pl.BlockSpec((TB, out_p), lambda i: (i, 0)),
        compiler_params=pltpu.CompilerParams(
            dimension_semantics=("parallel",)),
    )(x, w1_p, b1_p, w2_p, b2_p, w3_p, b3_p)

    # Strip batch/lane padding; tiny slice, cast back to f32 for the caller.
    return out_padded[:B, :out_features].astype(jnp.float32)


def init_params(key, in_features, h1, h2, out_features):
    """Deterministic synthetic parameters (shapes match the nn.Linear layers),
    stored in (in, out) layout == PyTorch weight.T."""
    ks = jax.random.split(key, 6)
    w1_t = jax.random.normal(ks[0], (in_features, h1), jnp.float32) * 0.1
    b1 = jax.random.normal(ks[1], (1, h1), jnp.float32) * 0.1
    w2_t = jax.random.normal(ks[2], (h1, h2), jnp.float32) * 0.1
    b2 = jax.random.normal(ks[3], (1, h2), jnp.float32) * 0.1
    w3_t = jax.random.normal(ks[4], (h2, out_features), jnp.float32) * 0.1
    b3 = jax.random.normal(ks[5], (1, out_features), jnp.float32) * 0.1
    return w1_t, b1, w2_t, b2, w3_t, b3


if __name__ == "__main__":
    # Small shapes consistent with a digit-classifier MLP.
    batch, in_features, h1, h2, out_features = 8, 64, 32, 32, 10

    key = jax.random.PRNGKey(0)
    kx, kp = jax.random.split(key)
    x = jax.random.normal(kx, (batch, in_features), jnp.float32)
    params = init_params(kp, in_features, h1, h2, out_features)

    # Pack (pad + bf16-cast) weights ONCE, outside the forward path.
    packed, out_f = pack_params(*params)

    out = jax.block_until_ready(
        classifier_forward(x, *packed, out_features=out_f))
    assert out.shape == (batch, out_features)
    assert out.dtype == jnp.float32

    w1_t, b1, w2_t, b2, w3_t, b3 = params

    # Reference 1: bf16-consistent (same casts as the kernel, bf16 final store).
    xb = x.astype(jnp.bfloat16)
    hb = jnp.maximum(
        jnp.dot(xb, w1_t.astype(jnp.bfloat16),
                preferred_element_type=jnp.float32) + b1, 0.0)
    hb = jnp.maximum(
        jnp.dot(hb.astype(jnp.bfloat16), w2_t.astype(jnp.bfloat16),
                preferred_element_type=jnp.float32) + b2, 0.0)
    ref_bf16 = (jnp.dot(hb.astype(jnp.bfloat16), w3_t.astype(jnp.bfloat16),
                        preferred_element_type=jnp.float32) + b3
                ).astype(jnp.bfloat16).astype(jnp.float32)
    assert jnp.allclose(out, ref_bf16, atol=5e-3, rtol=5e-3)

    # Reference 2: full-f32 PyTorch semantics, loose tolerance (bf16 compute).
    ref_f32 = jnp.maximum(x @ w1_t + b1, 0.0)
    ref_f32 = jnp.maximum(ref_f32 @ w2_t + b2, 0.0)
    ref_f32 = ref_f32 @ w3_t + b3
    assert jnp.allclose(out, ref_f32, atol=5e-2, rtol=5e-2)

    print("KERNEL_OK")
</pallas_src>

<mosaic_0001>
module attributes {stable_mosaic.version = 11 : i64} {
  func.func @mlp_kernel(%arg0: i32, %arg1: memref<16x64xf32, #tpu.memory_space<vmem>>, %arg2: memref<64x128xbf16, #tpu.memory_space<vmem>>, %arg3: memref<1x128xf32, #tpu.memory_space<vmem>>, %arg4: memref<128x128xbf16, #tpu.memory_space<vmem>>, %arg5: memref<1x128xf32, #tpu.memory_space<vmem>>, %arg6: memref<128x128xbf16, #tpu.memory_space<vmem>>, %arg7: memref<1x128xf32, #tpu.memory_space<vmem>>, %arg8: memref<16x128xbf16, #tpu.memory_space<vmem>>) attributes {dimension_semantics = [#tpu.dimension_semantics<parallel>], iteration_bounds = array<i64: 1>, scalar_prefetch = 0 : i64, scratch_operands = 0 : i64, tpu.core_type = #tpu.core_type<tc>, window_params = [{transform_indices = @transform_0, window_bounds = array<i64: 16, 64>}, {pipeline_mode = #tpu.pipeline_mode<synchronous>, transform_indices = @transform_1, window_bounds = array<i64: 64, 128>}, {pipeline_mode = #tpu.pipeline_mode<synchronous>, transform_indices = @transform_2, window_bounds = array<i64: 1, 128>}, {pipeline_mode = #tpu.pipeline_mode<synchronous>, transform_indices = @transform_3, window_bounds = array<i64: 128, 128>}, {pipeline_mode = #tpu.pipeline_mode<synchronous>, transform_indices = @transform_4, window_bounds = array<i64: 1, 128>}, {pipeline_mode = #tpu.pipeline_mode<synchronous>, transform_indices = @transform_5, window_bounds = array<i64: 128, 128>}, {pipeline_mode = #tpu.pipeline_mode<synchronous>, transform_indices = @transform_6, window_bounds = array<i64: 1, 128>}, {transform_indices = @transform_7, window_bounds = array<i64: 16, 128>}]} {
    %c0 = arith.constant 0 : index
    %c0_0 = arith.constant 0 : index
    %0 = vector.load %arg1[%c0, %c0_0] : memref<16x64xf32, #tpu.memory_space<vmem>>, vector<16x64xf32>
    %1 = arith.truncf %0 : vector<16x64xf32> to vector<16x64xbf16>
    %c0_1 = arith.constant 0 : index
    %c0_2 = arith.constant 0 : index
    %2 = vector.load %arg2[%c0_1, %c0_2] : memref<64x128xbf16, #tpu.memory_space<vmem>>, vector<64x128xbf16>
    %cst = arith.constant dense<0.000000e+00> : vector<16x128xf32>
    %3 = tpu.matmul %1, %2, %cst {dimension_numbers = #tpu.dot_dimension_numbers<[1], [0], [0], [1], [0, 0, 1, 1], [], []>} : vector<16x64xbf16>, vector<64x128xbf16>, vector<16x128xf32> -> vector<16x128xf32>
    %c0_3 = arith.constant 0 : index
    %c0_4 = arith.constant 0 : index
    %4 = vector.load %arg3[%c0_3, %c0_4] : memref<1x128xf32, #tpu.memory_space<vmem>>, vector<1x128xf32>
    %5 = vector.broadcast %4 : vector<1x128xf32> to vector<16x128xf32>
    %6 = arith.addf %3, %5 : vector<16x128xf32>
    %cst_5 = arith.constant 0.000000e+00 : f32
    %7 = vector.broadcast %cst_5 : f32 to vector<16x128xf32>
    %8 = arith.maximumf %6, %7 : vector<16x128xf32>
    %9 = arith.truncf %8 : vector<16x128xf32> to vector<16x128xbf16>
    %c0_6 = arith.constant 0 : index
    %c0_7 = arith.constant 0 : index
    %10 = vector.load %arg4[%c0_6, %c0_7] : memref<128x128xbf16, #tpu.memory_space<vmem>>, vector<128x128xbf16>
    %cst_8 = arith.constant dense<0.000000e+00> : vector<16x128xf32>
    %11 = tpu.matmul %9, %10, %cst_8 {dimension_numbers = #tpu.dot_dimension_numbers<[1], [0], [0], [1], [0, 0, 1, 1], [], []>} : vector<16x128xbf16>, vector<128x128xbf16>, vector<16x128xf32> -> vector<16x128xf32>
    %c0_9 = arith.constant 0 : index
    %c0_10 = arith.constant 0 : index
    %12 = vector.load %arg5[%c0_9, %c0_10] : memref<1x128xf32, #tpu.memory_space<vmem>>, vector<1x128xf32>
    %13 = vector.broadcast %12 : vector<1x128xf32> to vector<16x128xf32>
    %14 = arith.addf %11, %13 : vector<16x128xf32>
    %cst_11 = arith.constant 0.000000e+00 : f32
    %15 = vector.broadcast %cst_11 : f32 to vector<16x128xf32>
    %16 = arith.maximumf %14, %15 : vector<16x128xf32>
    %17 = arith.truncf %16 : vector<16x128xf32> to vector<16x128xbf16>
    %c0_12 = arith.constant 0 : index
    %c0_13 = arith.constant 0 : index
    %18 = vector.load %arg6[%c0_12, %c0_13] : memref<128x128xbf16, #tpu.memory_space<vmem>>, vector<128x128xbf16>
    %cst_14 = arith.constant dense<0.000000e+00> : vector<16x128xf32>
    %19 = tpu.matmul %17, %18, %cst_14 {dimension_numbers = #tpu.dot_dimension_numbers<[1], [0], [0], [1], [0, 0, 1, 1], [], []>} : vector<16x128xbf16>, vector<128x128xbf16>, vector<16x128xf32> -> vector<16x128xf32>
    %c0_15 = arith.constant 0 : index
    %c0_16 = arith.constant 0 : index
    %20 = vector.load %arg7[%c0_15, %c0_16] : memref<1x128xf32, #tpu.memory_space<vmem>>, vector<1x128xf32>
    %21 = vector.broadcast %20 : vector<1x128xf32> to vector<16x128xf32>
    %22 = arith.addf %19, %21 : vector<16x128xf32>
    %23 = arith.truncf %22 : vector<16x128xf32> to vector<16x128xbf16>
    %c0_17 = arith.constant 0 : index
    %c0_18 = arith.constant 0 : index
    %24 = vector.load %arg8[%c0_17, %c0_18] : memref<16x128xbf16, #tpu.memory_space<vmem>>, vector<16x128xbf16>
    tpu.vector_store %arg8[%c0_17, %c0_18], %23 {strides = array<i32>} : memref<16x128xbf16, #tpu.memory_space<vmem>>, vector<16x128xbf16>,
    return
  }
  func.func @transform_0(%arg0: i32) -> (i32, i32) {
    %c0_i32 = arith.constant 0 : i32
    %c0_i32_0 = arith.constant 0 : i32
    return %arg0, %c0_i32 : i32, i32
  }
  func.func @transform_1(%arg0: i32) -> (i32, i32) {
    %c0_i32 = arith.constant 0 : i32
    %c0_i32_0 = arith.constant 0 : i32
    %c0_i32_1 = arith.constant 0 : i32
    return %c0_i32, %c0_i32_0 : i32, i32
  }
  func.func @transform_2(%arg0: i32) -> (i32, i32) {
    %c0_i32 = arith.constant 0 : i32
    %c0_i32_0 = arith.constant 0 : i32
    %c0_i32_1 = arith.constant 0 : i32
    return %c0_i32, %c0_i32_0 : i32, i32
  }
  func.func @transform_3(%arg0: i32) -> (i32, i32) {
    %c0_i32 = arith.constant 0 : i32
    %c0_i32_0 = arith.constant 0 : i32
    %c0_i32_1 = arith.constant 0 : i32
    return %c0_i32, %c0_i32_0 : i32, i32
  }
  func.func @transform_4(%arg0: i32) -> (i32, i32) {
    %c0_i32 = arith.constant 0 : i32
    %c0_i32_0 = arith.constant 0 : i32
    %c0_i32_1 = arith.constant 0 : i32
    return %c0_i32, %c0_i32_0 : i32, i32
  }
  func.func @transform_5(%arg0: i32) -> (i32, i32) {
    %c0_i32 = arith.constant 0 : i32
    %c0_i32_0 = arith.constant 0 : i32
    %c0_i32_1 = arith.constant 0 : i32
    return %c0_i32, %c0_i32_0 : i32, i32
  }
  func.func @transform_6(%arg0: i32) -> (i32, i32) {
    %c0_i32 = arith.constant 0 : i32
    %c0_i32_0 = arith.constant 0 : i32
    %c0_i32_1 = arith.constant 0 : i32
    return %c0_i32, %c0_i32_0 : i32, i32
  }
  func.func @transform_7(%arg0: i32) -> (i32, i32) {
    %c0_i32 = arith.constant 0 : i32
    %c0_i32_0 = arith.constant 0 : i32
    return %arg0, %c0_i32 : i32, i32
  }
}

</mosaic_0001>

<bundles_post_ra>
// kernel: classifier_forward.1
= control target key start
LH: loop header
LB: loop body
LE: loop exit
PB: predicated region body
PF: predicated region fallthrough
CT: control target
= control target key end

     0   :  { %12 = vsyncpa [#allocation3], 0  ;;  %s573_s0 = inlined_call_operand.vmem [shape: f32[16,64], index: 0, kind: input, shape index: {}]   ;;  %s574_s1 = inlined_call_operand.hbm [shape: bf16[64,128], index: 1, kind: input, shape index: {}]   ;;  %s575_s2 = inlined_call_operand.vmem [shape: f32[1,128], index: 2, kind: input, shape index: {}]   ;;  %s576_s3 = inlined_call_operand.hbm [shape: bf16[128,128], index: 3, kind: input, shape index: {}]   ;;  %s577_s4 = inlined_call_operand.vmem [shape: f32[1,128], index: 4, kind: input, shape index: {}]   ;;  %s578_s5 = inlined_call_operand.hbm [shape: bf16[128,128], index: 5, kind: input, shape index: {}]   ;;  %s579_s6 = inlined_call_operand.vmem [shape: f32[1,128], index: 6, kind: input, shape index: {}]   ;;  %s580_s7 = inlined_call_operand.vmem [shape: bf16[16,128], index: 7, kind: output, shape index: {}]  }
   0x1   :  { %13 = vsyncpa [#allocation5], 0  ;;  %s35_s26 = sshll.u32 %s576_s3, 4  ;;  %s501_s27 = smov [#allocation4]   ;;  %s36_s26 = int_to_ptr.hbm [resolvable:$true] %s35_s26 }
   0x2   :  { %s37_s28 = sshll.u32 %s501_s27, 4  ;;  %s20_s8 = sshll.u32 %s574_s1, 4  ;;  %s38_s28 = int_to_ptr.vmem [resolvable:$true] %s37_s28  ;;  %s21_s8 = int_to_ptr.hbm [resolvable:$true] %s20_s8 }
   0x3   :  { %s502_s9 = smov 64   ;;  %s503_s10 = smov 4  }
   0x4   :  { %43 = dma.hbm_to_vmem [thread:$0]  %s36_s26, 1024, %s38_s28, [#allocation5], %s502_s9, %s502_s9, %s503_s10  }
   0x5   :  { %s504_s11 = smov [#allocation2]   ;;  %s50_s15 = sshll.u32 %s578_s5, 4  ;;  %s51_s15 = int_to_ptr.hbm [resolvable:$true] %s50_s15 }
   0x6   :  { %s22_s12 = sshll.u32 %s504_s11, 4  ;;  %s505_s3 = smov [#allocation6]   ;;  %s23_s12 = int_to_ptr.vmem [resolvable:$true] %s22_s12 }
   0x7   :  { %28 = dma.hbm_to_vmem [thread:$0]  %s21_s8, 512, %s23_s12, [#allocation3], %s502_s9, %s502_s9, %s503_s10  }
   0x8   :  { %s52_s16 = sshll.u32 %s505_s3, 4  ;;  %s53_s16 = int_to_ptr.vmem [resolvable:$true] %s52_s16 }
   0x9   :  { %58 = dma.hbm_to_vmem [thread:$0]  %s51_s15, 1024, %s53_s16, [#allocation5], %s502_s9, %s502_s9, %s503_s10  }
   0xa   :  { %497 = dma.done.wait [#allocation3], 512  }
   0xb   :  { %498 = vsyncadd [#allocation3], 4294966784 }
   0xc   :  { %499 = dma.done.wait [#allocation5], 2048  }
   0xd   :  { %500 = vsyncadd [#allocation5], 4294965248  ;;  %v395_v0 = vld [vmem:[#allocation2 + $0x18] sm:$0xff]  ;;  %v394_v1 = vld [vmem:[#allocation2 + $0x10] sm:$0xff]  ;;  %vm113_vm0 = vcmask 523264  }
   0xe   :  { %121 = vmatpush.bf16.msra.mxu0 %v395_v0  ;;  %v403_v2 = vld [vmem:[#allocation4 + $0x38] sm:$0xff]  ;;  %v402_v3 = vld [vmem:[#allocation4 + $0x30] sm:$0xff]  ;;  %v393_v4 = vld [vmem:[#allocation2 + $0x8] sm:$0xff] }
   0xf   :  { %202 = vmatpush.bf16.msra.mxu1 %v403_v2  ;;  %v401_v5 = vld [vmem:[#allocation4 + $0x28] sm:$0xff]  ;;  %v392_v6 = vld [vmem:[#allocation2] sm:$0xff]  ;;  %v399_v11 = vld [vmem:[#allocation4 + $0x18] sm:$0xff] }
  0x10   :  { %v74_v7 = vld [vmem:[%s573_s0] sm:$0xff]  ;;  %v75_v8 = vld [vmem:[%s573_s0 + $0x8] sm:$0xff]  ;;  %v398_v12 = vld [vmem:[#allocation4 + $0x10] sm:$0xff] }
  0x11   :  { %v400_v9 = vld [vmem:[#allocation4 + $0x20] sm:$0xff]  ;;  %v76_v10 = vpack.c.bf16 %v75_v8, %v74_v7  ;;  %v397_v13 = vld [vmem:[#allocation4 + $0x8] sm:$0xff]  ;;  %v411_v15 = vld [vmem:[#allocation6 + $0x38] sm:$0xff] }
  0x12   :  { %122 = vmatpush.bf16.msra.mxu0 %v394_v1  ;;  %v396_v14 = vld [vmem:[#allocation4] sm:$0xff]  ;;  %287 = vmatpush.bf16.msra.mxu2 %v411_v15  ;;  %v410_v16 = vld [vmem:[#allocation6 + $0x30] sm:$0xff]  ;;  %v409_v17 = vld [vmem:[#allocation6 + $0x28] sm:$0xff] }
  0x13   :  { %203 = vmatpush.bf16.msra.mxu1 %v402_v3  ;;  %v408_v18 = vld [vmem:[#allocation6 + $0x20] sm:$0xff]  ;;  %v407_v27 = vld [vmem:[#allocation6 + $0x18] sm:$0xff]  ;;  %v406_v28 = vld [vmem:[#allocation6 + $0x10] sm:$0xff] }
  0x14   :  { %v422_v20 = vld [vmem:[%s575_s2] ss:$0 sm:$0xff]  ;;  %v405_v29 = vld [vmem:[#allocation6 + $0x8] sm:$0xff] }
  0x15   :  { %v404_v30 = vld [vmem:[#allocation6] sm:$0xff] }
  0x16   :  { %123 = vmatpush.bf16.msra.mxu0 %v393_v4  ;;  %288 = vmatpush.bf16.msra.mxu2 %v410_v16  ;;  %v423_v32 = vld [vmem:[%s577_s4] ss:$0 sm:$0xff] }
  0x17   :  { %204 = vmatpush.bf16.msra.mxu1 %v401_v5  ;;  %v424_v40 = vld [vmem:[%s579_s6] ss:$0 sm:$0xff] }
  0x1a   :  { %124 = vmatpush.bf16.msra.mxu0 %v392_v6  ;;  %289 = vmatpush.bf16.msra.mxu2 %v409_v17 }
  0x1b   :  { %205 = vmatpush.bf16.msra.mxu1 %v400_v9 }
  0x1d   :  { %327 = vmatmul.msk.bf16.vlgmr.msra.gmra.mxu0 %vm113_vm0, %v76_v10 }
  0x1e   :  { %290 = vmatpush.bf16.msra.mxu2 %v408_v18 }
  0x1f   :  { %206 = vmatpush.bf16.msra.mxu1 %v399_v11 }
  0x22   :  { %291 = vmatpush.bf16.msra.mxu2 %v407_v27 }
  0x23   :  { %207 = vmatpush.bf16.msra.mxu1 %v398_v12 }
  0x26   :  { %292 = vmatpush.bf16.msra.mxu2 %v406_v28 }
  0x27   :  { %208 = vmatpush.bf16.msra.mxu1 %v397_v13 }
  0x2a   :  { %293 = vmatpush.bf16.msra.mxu2 %v405_v29 }
  0x2b   :  { %209 = vmatpush.bf16.msra.mxu1 %v396_v14 }
  0x2e   :  { %294 = vmatpush.bf16.msra.mxu2 %v404_v30 }
  0x9a   :  { %v126_v19 = vpop.f32.mrf.mxu0 }
  0x9b   :  { %v127_v21 = vadd.f32 %v422_v20, %v126_v19 }
  0x9d   :  { %v131_v24 = vmax.f32 %v127_v21, 0.0 }
  0xa2   :  { %v128_v22 = vpop.f32.mrf.mxu0 }
  0xa3   :  { %v129_v23 = vadd.f32 %v422_v20, %v128_v22 }
  0xa5   :  { %v132_v25 = vmax.f32 %v129_v23, 0.0 }
  0xa7   :  { %v133_v26 = vpack.c.bf16 %v132_v25, %v131_v24 }
  0xa9   :  { %210 = vmatmul.bf16.vlgmr.msra.gmra.mxu1 %v133_v26 }
 0x126   :  { %v211_v31 = vpop.f32.mrf.mxu1 }
 0x127   :  { %v212_v33 = vadd.f32 %v423_v32, %v211_v31 }
 0x129   :  { %v216_v36 = vmax.f32 %v212_v33, 0.0 }
 0x12e   :  { %v213_v34 = vpop.f32.mrf.mxu1 }
 0x12f   :  { %v214_v35 = vadd.f32 %v423_v32, %v213_v34 }
 0x131   :  { %v217_v37 = vmax.f32 %v214_v35, 0.0 }
 0x133   :  { %v218_v38 = vpack.c.bf16 %v217_v37, %v216_v36 }
 0x135   :  { %295 = vmatmul.bf16.vlgmr.msra.gmra.mxu2 %v218_v38 }
 0x1b8   :  { %v296_v39 = vpop.f32.mrf.mxu2 }
 0x1b9   :  { %v297_v42 = vadd.f32 %v424_v40, %v296_v39 }
 0x1c0   :  { %v298_v41 = vpop.f32.mrf.mxu2 }
 0x1c1   :  { %v299_v43 = vadd.f32 %v424_v40, %v298_v41 }
 0x1c3   :  { %v415_v44 = vpack.c.bf16 %v299_v43, %v297_v42 }
 0x1c5   :  { %416 = vst [vmem:[%s580_s7] sm:$0xff] %v415_v44  }
 0x1c6   :  { %309 = vsyncpa [#allocation3], 1 }
 0x1c7   :  { %310 = vsyncpa [#allocation5], 1 }

</bundles_post_ra>
